<compile_context>
chip_gen: v7x
topology: tpu7x:2x2x1
jax: 0.10.0
libtpu: 0.0.40
codegen_flags: <defaults>
</compile_context>

<pallas_src>
import jax
import jax.numpy as jnp
from jax.experimental import pallas as pl
from jax.experimental.pallas import tpu as pltpu


# ----------------------------------------------------------------------------- helpers

def _round_up(x, m):
    return ((x + m - 1) // m) * m


def _vmem_budget_bytes():
    """Per-kernel VMEM byte budget, derived from queried capacity (v7x has only 64 MiB)."""
    cap = None
    try:
        cap = getattr(pltpu.get_tpu_info(), "vmem_capacity_bytes", None)
    except Exception:
        cap = None
    if not cap:
        cap = 64 << 20                       # assume the smallest (v7x per-TensorCore VMEM)
    return max(8 << 20, min(int(cap) // 3, 32 << 20))


def _choose_block_rows(n_rows, in_width, patch_width, out_width,
                       in_isz, cmp_isz, out_isz, fixed_bytes, align):
    """Rows of N per grid step from a VMEM budget (includes in-kernel intermediates)."""
    per_row = (2 * _round_up(in_width, 128) * in_isz        # double-buffered input block
               + 2 * _round_up(out_width, 128) * out_isz    # double-buffered output block
               + _round_up(patch_width, 128) * cmp_isz      # in-kernel patch matrix
               + _round_up(out_width, 128) * 4)             # f32 matmul accumulator
    avail = max(_vmem_budget_bytes() - fixed_bytes, per_row * align)
    tn = min(int(avail // per_row), 2048)
    # >=16 grid steps on large N (v7x shards the "parallel" axis over 2 TensorCores) while
    # keeping blocks >=256 rows to amortize the ~0.35us/step pipeline overhead.
    tn = min(tn, max(256, -(-n_rows // 16)))
    tn = max(align, (tn // align) * align)
    if tn >= n_rows:
        return n_rows
    steps = -(-n_rows // tn)
    if steps > 2 and steps % 2 == 1:          # prefer an even step count for v7x's 2 TCs
        tn_alt = _round_up(-(-n_rows // (steps + 1)), align)
        if 0 < tn_alt <= tn and (-(-n_rows // tn_alt)) % 2 == 0:
            tn = tn_alt
    return tn


# ------------------------------------------------------------------------ kernel bodies

def _patch_pieces(x, p, *, patch_len, stride, seq_len):
    """Static-slice pieces forming patch p of the replication-padded unfold (in VMEM)."""
    start = p * stride
    n_real = max(0, min(patch_len, seq_len - start))
    pieces = []
    if n_real > 0:
        pieces.append(x[:, start:start + n_real])
    if n_real < patch_len:                    # tail of the patch lies in the replicated pad
        last = x[:, seq_len - 1:seq_len]
        pieces.append(jnp.broadcast_to(last, (x.shape[0], patch_len - n_real)))
    return pieces


def _concat(pieces):
    return pieces[0] if len(pieces) == 1 else jnp.concatenate(pieces, axis=-1)


def _make_blockdiag_kernel(num_patches, patch_len, stride, seq_len, compute_dtype):
    """One MXU call per grid step: (TN, P*patch_len) @ block-diag W_bd -> (TN, P*d_model)."""
    def kernel(x_ref, wbd_ref, pos_ref, o_ref):
        x = x_ref[...]
        if x.dtype != compute_dtype:
            x = x.astype(compute_dtype)       # in-kernel cast: no extra HBM pass
        if stride == patch_len:
            # Non-overlapping unfold + replication pad == contiguous slice + replicated tail.
            n_real = min(seq_len, num_patches * patch_len)
            pieces = [x[:, :n_real]]
            n_tail = num_patches * patch_len - n_real
            if n_tail > 0:
                pieces.append(jnp.broadcast_to(x[:, seq_len - 1:seq_len],
                                               (x.shape[0], n_tail)))
        else:
            pieces = []
            for p in range(num_patches):      # static unroll (P is tens for TSlib configs)
                pieces.extend(_patch_pieces(x, p, patch_len=patch_len,
                                            stride=stride, seq_len=seq_len))
        xp = _concat(pieces)                                          # (TN, P*patch_len)
        y = jnp.dot(xp, wbd_ref[...], preferred_element_type=jnp.float32)
        o_ref[...] = (y + pos_ref[...]).astype(o_ref.dtype)          # one lane-dense store
    return kernel


def _make_per_patch_kernel(num_patches, patch_len, stride, seq_len, d_model, compute_dtype):
    """Fallback when W_bd would be too big: per-patch dot, written straight into o_ref."""
    def kernel(x_ref, w_ref, pos_ref, o_ref):
        x = x_ref[...]
        if x.dtype != compute_dtype:
            x = x.astype(compute_dtype)
        w = w_ref[...]
        pos = pos_ref[...]
        for p in range(num_patches):          # static unroll; no output concatenation
            xp = _concat(_patch_pieces(x, p, patch_len=patch_len,
                                       stride=stride, seq_len=seq_len))
            yp = jnp.dot(xp, w, preferred_element_type=jnp.float32)
            yp = yp + pos[:, p * d_model:(p + 1) * d_model]
            o_ref[:, p * d_model:(p + 1) * d_model] = yp.astype(o_ref.dtype)
    return kernel


# ------------------------------------------------------------------------- pallas_call

def _patch_embedding_pallas(x2d, w_arr, pos_flat, *, num_patches, patch_len, stride,
                            d_model, use_block_diag, compute_dtype, out_dtype,
                            block_rows=None):
    """x2d: (N, L) raw rows; w_arr: W_bd or W^T; pos_flat: (1, P*d_model) f32."""
    n_rows, seq_len = x2d.shape
    k_patch = num_patches * patch_len
    k_out = num_patches * d_model

    in_isz = jnp.dtype(x2d.dtype).itemsize
    cmp_isz = jnp.dtype(compute_dtype).itemsize
    out_isz = jnp.dtype(out_dtype).itemsize
    align = 8 if (in_isz >= 4 and out_isz >= 4) else 16      # sublane tiling of the blocks

    w_sub = 8 if jnp.dtype(w_arr.dtype).itemsize >= 4 else 16
    fixed = (_round_up(w_arr.shape[0], w_sub) * _round_up(w_arr.shape[1], 128)
             * jnp.dtype(w_arr.dtype).itemsize)               # resident weight
    fixed += 8 * _round_up(k_out, 128) * 4                    # resident pos (>=8 sublanes)

    tn = block_rows if block_rows is not None else _choose_block_rows(
        n_rows, seq_len, k_patch, k_out, in_isz, cmp_isz, out_isz, fixed, align)
    tn = min(tn, n_rows)
    grid = pl.cdiv(n_rows, tn)                # no jnp.pad / out-slice: boundary block masked

    per_row = (2 * _round_up(seq_len, 128) * in_isz
               + 2 * _round_up(k_out, 128) * out_isz
               + _round_up(k_patch, 128) * cmp_isz
               + _round_up(k_out, 128) * 4)
    needed = tn * per_row + fixed
    # >= the v5e 16 MiB scoped default, <= ~40 MiB so v7x's 64 MiB physical VMEM keeps slack.
    vmem_limit = int(min(max(needed + (8 << 20), 32 << 20), 40 << 20))
    vmem_limit = max(vmem_limit, int(needed) + (2 << 20))

    if use_block_diag:
        kernel = _make_blockdiag_kernel(num_patches, patch_len, stride, seq_len,
                                        compute_dtype)
    else:
        kernel = _make_per_patch_kernel(num_patches, patch_len, stride, seq_len, d_model,
                                        compute_dtype)

    return pl.pallas_call(
        kernel,
        out_shape=jax.ShapeDtypeStruct((n_rows, k_out), out_dtype),
        grid_spec=pltpu.PrefetchScalarGridSpec(
            num_scalar_prefetch=0,
            grid=(grid,),
            in_specs=[
                pl.BlockSpec((tn, seq_len), lambda i: (i, 0)),   # lane-dense raw input rows
                pl.BlockSpec(w_arr.shape, lambda i: (0, 0)),     # resident weight
                pl.BlockSpec((1, k_out), lambda i: (0, 0)),      # resident flattened pos (f32)
            ],
            out_specs=pl.BlockSpec((tn, k_out), lambda i: (i, 0)),  # lane-dense output rows
        ),
        compiler_params=pltpu.CompilerParams(
            dimension_semantics=("parallel",),
            vmem_limit_bytes=vmem_limit,
        ),
    )(x2d, w_arr, pos_flat)


# ----------------------------------------------------------------------------- wrapper

def patch_embedding_forward(x, weight, pos_emb, patch_len, stride, *,
                            compute_dtype=None, out_dtype=None,
                            use_block_diag=None, block_rows=None):
    """PatchEmbedding forward (dropout = identity / eval mode).

    x: (B, n_vars, L); weight: (d_model, patch_len) from nn.Linear(bias=False);
    pos_emb: (>=P, d_model).
    compute_dtype: optional matmul dtype (e.g. jnp.bfloat16); cast happens in-kernel,
      accumulation and the +pos add stay f32.
    out_dtype: optional output dtype (e.g. jnp.bfloat16); cast only at the final store.
    Returns (B*n_vars, P, d_model).
    """
    B, C, L = x.shape
    d_model = weight.shape[0]
    N = B * C
    P = (L + stride - patch_len) // stride + 1      # after ReplicationPad1d((0, stride))

    cmp_dtype = jnp.dtype(x.dtype) if compute_dtype is None else jnp.dtype(compute_dtype)
    out_dtype = jnp.dtype(x.dtype) if out_dtype is None else jnp.dtype(out_dtype)

    x2d = x.reshape(N, L)                           # free reshape; pad/unfold fused in-kernel
    w_t = weight.T.astype(cmp_dtype)                # (patch_len, d_model), tiny
    pos_flat = pos_emb[:P, :].astype(jnp.float32).reshape(1, P * d_model)

    # Block-diagonal weight => single MXU call + single lane-dense store per grid step.
    wbd_bytes = (_round_up(P * patch_len, 8 if cmp_dtype.itemsize >= 4 else 16)
                 * _round_up(P * d_model, 128) * cmp_dtype.itemsize)
    if use_block_diag is None:
        use_block_diag = wbd_bytes <= (6 << 20)     # keep W_bd comfortably VMEM-resident
    w_arr = jnp.kron(jnp.eye(P, dtype=cmp_dtype), w_t) if use_block_diag else w_t

    out_flat = _patch_embedding_pallas(
        x2d, w_arr, pos_flat, num_patches=P, patch_len=patch_len, stride=stride,
        d_model=d_model, use_block_diag=use_block_diag, compute_dtype=cmp_dtype,
        out_dtype=out_dtype, block_rows=block_rows)
    # TODO(synk): nn.Dropout is identity in eval mode; training-mode dropout not applied.
    return out_flat.reshape(N, P, d_model)


# -------------------------------------------------------------------------------- main

if __name__ == "__main__":
    key = jax.random.PRNGKey(0)
    k_x, k_w, k_pos, k_x2 = jax.random.split(key, 4)

    d_model, patch_len, stride = 32, 8, 8
    B, n_vars, L = 2, 8, 16

    weight = jax.random.normal(k_w, (d_model, patch_len), dtype=jnp.float32) * 0.1
    pos_emb = jax.random.normal(k_pos, (1000, d_model), dtype=jnp.float32)
    x = jax.random.normal(k_x, (B, n_vars, L), dtype=jnp.float32)

    def reference(x, weight, pos_emb, patch_len, stride):
        Bc, Cc, Lc = x.shape
        xp = jnp.concatenate([x, jnp.repeat(x[:, :, -1:], stride, axis=-1)], axis=-1)
        Pn = (Lc + stride - patch_len) // stride + 1
        idx = (jnp.arange(Pn) * stride)[:, None] + jnp.arange(patch_len)[None, :]
        patches = xp[:, :, idx].reshape(Bc * Cc, Pn, patch_len)
        lin = jnp.einsum("npl,dl->npd", patches, weight,
                         precision=jax.lax.Precision.HIGHEST)
        return lin + pos_emb[:Pn, :]

    # 1) f32, non-overlapping (stride == patch_len), block-diagonal-weight path.
    out = jax.block_until_ready(patch_embedding_forward(x, weight, pos_emb, patch_len, stride))
    ref = reference(x, weight, pos_emb, patch_len, stride)
    assert out.shape == ref.shape, (out.shape, ref.shape)
    assert jnp.allclose(out, ref, atol=2e-3, rtol=2e-3), "f32 mismatch vs reference"

    # 2) bf16 compute + bf16 output (in-kernel cast, f32 accumulation / +pos add) — looser tol.
    out_bf16 = jax.block_until_ready(patch_embedding_forward(
        x, weight, pos_emb, patch_len, stride,
        compute_dtype=jnp.bfloat16, out_dtype=jnp.bfloat16))
    assert out_bf16.dtype == jnp.bfloat16
    assert jnp.allclose(out_bf16.astype(jnp.float32), ref, atol=1e-1, rtol=1e-1), \
        "bf16 mismatch vs reference"

    # 3) Overlapping windows (stride < patch_len), pad/unfold fused in-kernel, f32.
    out_ov = jax.block_until_ready(patch_embedding_forward(x, weight, pos_emb, patch_len, 4))
    ref_ov = reference(x, weight, pos_emb, patch_len, 4)
    assert out_ov.shape == ref_ov.shape, (out_ov.shape, ref_ov.shape)
    assert jnp.allclose(out_ov, ref_ov, atol=2e-3, rtol=2e-3), "overlap mismatch vs reference"

    # 4) Non-divisible row count: grid = cdiv, masked boundary block (no pad / slice).
    x2 = jax.random.normal(k_x2, (3, 4, L), dtype=jnp.float32)
    out_b = jax.block_until_ready(patch_embedding_forward(
        x2, weight, pos_emb, patch_len, stride, block_rows=8))
    ref_b = reference(x2, weight, pos_emb, patch_len, stride)
    assert jnp.allclose(out_b, ref_b, atol=2e-3, rtol=2e-3), "boundary-block mismatch"

    # 5) Per-patch fallback path (used when W_bd would be too large for VMEM residency).
    out_pp = jax.block_until_ready(patch_embedding_forward(
        x, weight, pos_emb, patch_len, stride, use_block_diag=False))
    assert jnp.allclose(out_pp, ref, atol=2e-3, rtol=2e-3), "per-patch path mismatch"

    print("KERNEL_OK")
</pallas_src>

<mosaic_0001>
module attributes {stable_mosaic.version = 11 : i64} {
  func.func @kernel(%arg0: i32, %arg1: memref<16x16xf32, #tpu.memory_space<vmem>>, %arg2: memref<24x96xf32, #tpu.memory_space<vmem>>, %arg3: memref<1x96xf32, #tpu.memory_space<vmem>>, %arg4: memref<16x96xf32, #tpu.memory_space<vmem>>) attributes {dimension_semantics = [#tpu.dimension_semantics<parallel>], iteration_bounds = array<i64: 1>, scalar_prefetch = 0 : i64, scratch_operands = 0 : i64, tpu.core_type = #tpu.core_type<tc>, window_params = [{transform_indices = @transform_0, window_bounds = array<i64: 16, 16>}, {pipeline_mode = #tpu.pipeline_mode<synchronous>, transform_indices = @transform_1, window_bounds = array<i64: 24, 96>}, {pipeline_mode = #tpu.pipeline_mode<synchronous>, transform_indices = @transform_2, window_bounds = array<i64: 1, 96>}, {transform_indices = @transform_3, window_bounds = array<i64: 16, 96>}]} {
    %c0 = arith.constant 0 : index
    %c0_0 = arith.constant 0 : index
    %0 = vector.load %arg1[%c0, %c0_0] : memref<16x16xf32, #tpu.memory_space<vmem>>, vector<16x16xf32>
    %1 = vector.extract_strided_slice %0 {offsets = [0, 15], sizes = [16, 1], strides = [1, 1]} : vector<16x16xf32> to vector<16x1xf32>
    %2 = vector.shape_cast %1 : vector<16x1xf32> to vector<16x1xf32>
    %3 = vector.broadcast %2 : vector<16x1xf32> to vector<16x8xf32>
    %4 = tpu.concatenate %0, %3 in 1 : vector<16x16xf32>, vector<16x8xf32> -> vector<16x24xf32>
    %c0_1 = arith.constant 0 : index
    %c0_2 = arith.constant 0 : index
    %5 = vector.load %arg2[%c0_1, %c0_2] : memref<24x96xf32, #tpu.memory_space<vmem>>, vector<24x96xf32>
    %cst = arith.constant dense<0.000000e+00> : vector<16x96xf32>
    %6 = tpu.matmul %4, %5, %cst {dimension_numbers = #tpu.dot_dimension_numbers<[1], [0], [0], [1], [0, 0, 1, 1], [], []>} : vector<16x24xf32>, vector<24x96xf32>, vector<16x96xf32> -> vector<16x96xf32>
    %c0_3 = arith.constant 0 : index
    %c0_4 = arith.constant 0 : index
    %7 = vector.load %arg3[%c0_3, %c0_4] : memref<1x96xf32, #tpu.memory_space<vmem>>, vector<1x96xf32>
    %8 = vector.broadcast %7 : vector<1x96xf32> to vector<16x96xf32>
    %9 = arith.addf %6, %8 : vector<16x96xf32>
    %c0_5 = arith.constant 0 : index
    %c0_6 = arith.constant 0 : index
    %10 = vector.load %arg4[%c0_5, %c0_6] : memref<16x96xf32, #tpu.memory_space<vmem>>, vector<16x96xf32>
    tpu.vector_store %arg4[%c0_5, %c0_6], %9 {strides = array<i32>} : memref<16x96xf32, #tpu.memory_space<vmem>>, vector<16x96xf32>,
    return
  }
  func.func @transform_0(%arg0: i32) -> (i32, i32) {
    %c0_i32 = arith.constant 0 : i32
    %c0_i32_0 = arith.constant 0 : i32
    return %arg0, %c0_i32 : i32, i32
  }
  func.func @transform_1(%arg0: i32) -> (i32, i32) {
    %c0_i32 = arith.constant 0 : i32
    %c0_i32_0 = arith.constant 0 : i32
    %c0_i32_1 = arith.constant 0 : i32
    return %c0_i32, %c0_i32_0 : i32, i32
  }
  func.func @transform_2(%arg0: i32) -> (i32, i32) {
    %c0_i32 = arith.constant 0 : i32
    %c0_i32_0 = arith.constant 0 : i32
    %c0_i32_1 = arith.constant 0 : i32
    return %c0_i32, %c0_i32_0 : i32, i32
  }
  func.func @transform_3(%arg0: i32) -> (i32, i32) {
    %c0_i32 = arith.constant 0 : i32
    %c0_i32_0 = arith.constant 0 : i32
    return %arg0, %c0_i32 : i32, i32
  }
}

</mosaic_0001>

<bundles_post_ra>
// kernel: tpu_custom_call.1
= control target key start
LH: loop header
LB: loop body
LE: loop exit
PB: predicated region body
PF: predicated region fallthrough
CT: control target
= control target key end

     0   :  { %8 = vsyncpa [#allocation3], 0  ;;  %s345_s0 = inlined_call_operand.hbm [shape: f32[16,16], index: 0, kind: input, shape index: {}]   ;;  %s346_s1 = inlined_call_operand.hbm [shape: f32[24,96], index: 1, kind: input, shape index: {}]   ;;  %s347_s2 = inlined_call_operand.vmem [shape: f32[1,96], index: 2, kind: input, shape index: {}]   ;;  %s348_s3 = inlined_call_operand.hbm [shape: f32[16,96], index: 3, kind: output, shape index: {}]  }
   0x1   :  { %9 = vsyncpa [#allocation6], 0 }
   0x2   :  { %10 = vsyncpa [#allocation4], 0  ;;  %s271_s12 = smov [#allocation2]   ;;  %s199_s16 = scalar_lea.hbm %s345_s0, 256 }
   0x3   :  { %s16_s13 = sshll.u32 %s271_s12, 4  ;;  %p200_p0 = scmp.ne.s32.totalorder %s345_s0, %s199_s16  ;;  %s17_s13 = int_to_ptr.vmem [resolvable:$true] %s16_s13 }
   0x4   :  { %p203_p1 = scmp.lt.u32.totalorder %s199_s16, %s345_s0 }
   0x6   :  { %p205_p2 = pnand %p203_p1, %p200_p0 }
   0x8   :  { %208 = shalt.err (!%p205_p2)
}
   0x9   :  { %s209_s21 = scalar_lea.vmem %s17_s13, 256  ;;  %p214_p4 = scmp.lt.s32.totalorder %s17_s13, %s17_s13 }
   0xa   :  { %p210_p3 = scmp.ne.s32.totalorder %s17_s13, %s209_s21  ;;  %p215_p5 = scmp.lt.s32.totalorder %s209_s21, %s209_s21 }
   0xc   :  { %p216_p6 = por %p215_p5, %p214_p4 }
   0xe   :  { %p217_p7 = pnand %p216_p6, %p210_p3 }
  0x10   :  { %220 = shalt.err (!%p217_p7)
}
  0x11   :  { %s272_s22 = smov 128   ;;  %s273_s23 = smov 8  }
  0x12   :  { %22 = dma.hbm_to_vmem [thread:$0]  %s345_s0, 256, %s17_s13, [#allocation3], %s272_s22, %s272_s22, %s273_s23  }
  0x13   :  { %s274_s26 = smov [#allocation5]   ;;  %s221_s30 = scalar_lea.hbm %s346_s1, 384 }
  0x14   :  { %s28_s27 = sshll.u32 %s274_s26, 4  ;;  %p222_p8 = scmp.ne.s32.totalorder %s346_s1, %s221_s30  ;;  %s29_s27 = int_to_ptr.vmem [resolvable:$true] %s28_s27 }
  0x15   :  { %p225_p9 = scmp.lt.u32.totalorder %s221_s30, %s346_s1 }
  0x17   :  { %p227_p10 = pnand %p225_p9, %p222_p8 }
  0x19   :  { %230 = shalt.err (!%p227_p10)
}
  0x1a   :  { %s231_s8 = scalar_lea.vmem %s29_s27, 384  ;;  %p236_p12 = scmp.lt.s32.totalorder %s29_s27, %s29_s27 }
  0x1b   :  { %p232_p11 = scmp.ne.s32.totalorder %s29_s27, %s231_s8  ;;  %p237_p13 = scmp.lt.s32.totalorder %s231_s8, %s231_s8 }
  0x1d   :  { %p238_p0 = por %p237_p13, %p236_p12 }
  0x1f   :  { %p239_p1 = pnand %p238_p0, %p232_p11 }
  0x21   :  { %242 = shalt.err (!%p239_p1)
}
  0x22   :  { %34 = dma.hbm_to_vmem [thread:$0]  %s346_s1, 384, %s29_s27, [#allocation6], %s272_s22, %s272_s22, %s273_s23  }
  0x23   :  { %265 = dma.done.wait [#allocation3], 256  }
  0x24   :  { %266 = vsyncadd [#allocation3], 4294967040 }
  0x25   :  { %267 = dma.done.wait [#allocation6], 384  }
  0x26   :  { %268 = vsyncadd [#allocation6], 4294966912  ;;  %v275_v0 = vmov 15   ;;  %v43_v1 = vld [vmem:[#allocation2] sm:$0xff]  ;;  %v58_v2 = vld [vmem:[#allocation5] sm:$0xff]  ;;  %vm55_vm0 = vcmask 130048  }
  0x27   :  { %198 = vset.pattern.permute.xlu0 %v275_v0  ;;  %v59_v3 = vld [vmem:[#allocation5 + $0x8] sm:$0xff]  ;;  %v44_v4 = vld [vmem:[#allocation2 + $0x8] sm:$0xff]  ;;  %v60_v6 = vld [vmem:[#allocation5 + $0x10] sm:$0xff]  ;;  %vm68_vm1 = vcmask 195584   ;;  %s276_s11 = smov [#allocation7]   ;;  %vm150_vm2 = vcmask 785408  }
  0x28   :  { %47 = vperm.xlu0 %198, %v43_v1   ;;  %v188_v5 = vpack.c.bf16 %v59_v3, %v58_v2  ;;  %v171_v11 = vld [vmem:[%s347_s2] ss:$0 sm:$0xff]  ;;  %s158_s12 = sshll.u32 %s276_s11, 4  ;;  %s159_s12 = int_to_ptr.vmem [resolvable:$true] %s158_s12 }
  0x29   :  { %s243_s13 = scalar_lea.vmem %s159_s12, 256  ;;  %p248_p3 = scmp.lt.s32.totalorder %s159_s12, %s159_s12 }
  0x2a   :  { %189 = vmatprep.subr.bf16.mxu0 %v188_v5  ;;  %p244_p2 = scmp.ne.s32.totalorder %s159_s12, %s243_s13  ;;  %p249_p4 = scmp.lt.s32.totalorder %s243_s13, %s243_s13 }
  0x2b   :  { %191 = vmatpush3.bf16.msra.mxu0 %v188_v5 }
  0x2c   :  { %52 = vperm.xlu0 %198, %v44_v4   ;;  %183 = vmatprep.subr.mxu0 %v60_v6  ;;  %p250_p5 = por %p249_p4, %p248_p3 }
  0x2e   :  { %p251_p6 = pnand %p250_p5, %p244_p2 }
  0x2f   :  { %184 = vmatpush3.msra.mxu0 %v60_v6 }
  0xa7   :  { %v48_v7 = vpop.permute.xlu0 %47 }
  0xa8   :  { %v56_v8 = vsel %vm55_vm0, %v43_v1, %v48_v7 }
  0xa9   :  { %185 = vmatprep.mubr.msk.f32.mxu0 %vm68_vm1, %v56_v8 }
  0xab   :  { %v53_v9 = vpop.permute.xlu0 %52 }
  0xac   :  { %v57_v10 = vsel %vm55_vm0, %v44_v4, %v53_v9 }
  0xad   :  { %186 = vmatmul.mubr.msk.f32.vlgmr.msra.gmra.mrb[0].mxu0 %vm68_vm1, %v57_v10 }
 0x180   :  { %v187_v12 = vpop.f32.mrb[0].mxu0 }
 0x181   :  { %v147_v13 = vadd.f32 %v187_v12, %v171_v11  ;;  %v141_v14 = vpop.f32.mrb[1].mxu0 }
 0x182   :  { %v142_v15 = vadd.f32 %v171_v11, %v141_v14 }
 0x183   :  { %152 = vst.msk [vmem:[#allocation7 + $0x8] sm:$0xff] %vm150_vm2, %v147_v13 }
 0x184   :  { %151 = vst.msk [vmem:[#allocation7] sm:$0xff] %vm150_vm2, %v142_v15 }
 0x185   :  { %254 = shalt.err (!%p251_p6)
}
 0x186   :  { %s255_s2 = scalar_lea.hbm %s348_s3, 256 }
 0x187   :  { %p256_p7 = scmp.ne.s32.totalorder %s348_s3, %s255_s2  ;;  %p259_p8 = scmp.lt.u32.totalorder %s255_s2, %s348_s3 }
 0x189   :  { %p261_p9 = pnand %p259_p8, %p256_p7 }
 0x18b   :  { %264 = shalt.err (!%p261_p9)
}
 0x18c   :  { %164 = dma.vmem_to_hbm [thread:$0]  %s159_s12, 256, %s348_s3, [#allocation4], %s272_s22, %s272_s22, %s273_s23  }
 0x18d   :  { %269 = dma.done.wait [#allocation4], 256  }
 0x18e   :  { %270 = vsyncadd [#allocation4], 4294967040 }
 0x18f   :  { %168 = vsyncpa [#allocation3], 1 }
 0x190   :  { %169 = vsyncpa [#allocation6], 1 }
 0x191   :  { %170 = vsyncpa [#allocation4], 1 }

</bundles_post_ra>
